<compile_context>
chip_gen: v6e
topology: v6e:2x2x1
jax: 0.10.0
libtpu: 0.0.40
codegen_flags: <defaults>
</compile_context>

<pallas_src>
import functools

import jax
import jax.numpy as jnp
from jax.experimental import pallas as pl
from jax.experimental.pallas import tpu as pltpu

LOG_STD_MAX = 2.0
LOG_STD_MIN = -5.0

HIDDEN = 256
LANE = 128


def _round_up(n: int, m: int) -> int:
    return ((n + m - 1) // m) * m


def _actor_kernel(x_ref, w1_ref, b1_ref, w2_ref, b2_ref, w3_ref, b3_ref,
                  out_ref, *, action_dim):
    wdt = w1_ref.dtype                      # weight dtype (f32 or bf16)
    x = x_ref[...].astype(wdt)

    # Layer 1: Linear(state_dim -> 256) + ReLU   (MXU, f32 accumulate; f32 bias add)
    h1 = jnp.dot(x, w1_ref[...], preferred_element_type=jnp.float32) + b1_ref[...]
    h1 = jnp.maximum(h1, 0.0)

    # Layer 2: Linear(256 -> 256) + ReLU
    h2 = jnp.dot(h1.astype(wdt), w2_ref[...],
                 preferred_element_type=jnp.float32) + b2_ref[...]
    h2 = jnp.maximum(h2, 0.0)

    # Layer 3: Linear(256 -> out_pad) + tanh   (out_pad = 2*action_dim padded to 128)
    h3 = jnp.dot(h2.astype(wdt), w3_ref[...],
                 preferred_element_type=jnp.float32) + b3_ref[...]
    h3 = jnp.tanh(h3)

    # Fused lane-dense output: lanes [0, action_dim) carry mu (= tanh output),
    # lanes >= action_dim carry std = exp(affine(tanh output)).
    # No cross-lane slicing here; the wrapper splits mu/std and drops pad lanes.
    std_full = jnp.exp(LOG_STD_MIN + 0.5 * (LOG_STD_MAX - LOG_STD_MIN) * (h3 + 1.0))
    lane = jax.lax.broadcasted_iota(jnp.int32, h3.shape, 1)
    out_ref[...] = jnp.where(lane < action_dim, h3, std_full)


@functools.partial(jax.jit, static_argnames=("action_dim", "block_b"))
def stochastic_actor_forward(x, w1, b1, w2, b2, w3, b3, *, action_dim, block_b=512):
    """Returns (mu, std), each (B, action_dim) float32.

    Weights are stored transposed vs. PyTorch, i.e. (in_features, out_features).
    Weights may be float32 or bfloat16; biases are float32 of shape (1, out).
    """
    B, state_dim = x.shape
    out_dim = 2 * action_dim
    out_pad = _round_up(out_dim, LANE)

    # Lane-pad layer-3 weight/bias so the fused output store is unmasked / full-lane.
    w3p = jnp.pad(w3, ((0, 0), (0, out_pad - out_dim)))
    b3p = jnp.pad(b3, ((0, 0), (0, out_pad - out_dim)))

    # Batch tile: big tiles for large B (pipelined over the grid), a single
    # sublane-aligned tile for tiny B.
    tb = min(block_b, _round_up(B, 8))
    bp = _round_up(B, tb)
    xp = jnp.pad(x, ((0, bp - B), (0, 0)))

    grid = (bp // tb,)
    out = pl.pallas_call(
        functools.partial(_actor_kernel, action_dim=action_dim),
        out_shape=jax.ShapeDtypeStruct((bp, out_pad), jnp.float32),
        grid_spec=pltpu.PrefetchScalarGridSpec(
            num_scalar_prefetch=0,
            grid=grid,
            in_specs=[
                pl.BlockSpec((tb, state_dim), lambda i: (i, 0)),   # x: tiled over batch
                pl.BlockSpec((state_dim, HIDDEN), lambda i: (0, 0)),  # W1 resident
                pl.BlockSpec((1, HIDDEN), lambda i: (0, 0)),          # b1 resident
                pl.BlockSpec((HIDDEN, HIDDEN), lambda i: (0, 0)),     # W2 resident
                pl.BlockSpec((1, HIDDEN), lambda i: (0, 0)),          # b2 resident
                pl.BlockSpec((HIDDEN, out_pad), lambda i: (0, 0)),    # W3 resident
                pl.BlockSpec((1, out_pad), lambda i: (0, 0)),         # b3 resident
            ],
            out_specs=pl.BlockSpec((tb, out_pad), lambda i: (i, 0)),
        ),
        compiler_params=pltpu.CompilerParams(
            dimension_semantics=("parallel",),   # v7x: shard batch tiles across 2 TCs
        ),
    )(xp, w1, b1, w2, b2, w3p, b3p)

    mu = out[:B, :action_dim]
    std = out[:B, action_dim:out_dim]
    return mu, std


def _orthogonal(key, shape):
    """Deterministic orthogonal init, like nn.init.orthogonal_."""
    rows, cols = shape
    n = max(rows, cols)
    a = jax.random.normal(key, (n, min(rows, cols)), dtype=jnp.float32)
    q, r = jnp.linalg.qr(a)
    q = q * jnp.sign(jnp.diagonal(r))
    q = q[:rows, :cols] if rows >= cols else q[:cols, :rows].T
    return q.astype(jnp.float32)


def init_params(key, state_dim, action_dim, weight_dtype=jnp.float32):
    k1, k2, k3, kb1, kb2, kb3 = jax.random.split(key, 6)
    # Weights stored as (in, out) = transpose of torch's (out, in).
    w1 = _orthogonal(k1, (state_dim, HIDDEN)).astype(weight_dtype)
    w2 = _orthogonal(k2, (HIDDEN, HIDDEN)).astype(weight_dtype)
    w3 = _orthogonal(k3, (HIDDEN, action_dim * 2)).astype(weight_dtype)
    # Biases: nn.Linear default U(-1/sqrt(fan_in), 1/sqrt(fan_in)), shaped (1, out), f32.
    b1 = jax.random.uniform(kb1, (1, HIDDEN), jnp.float32,
                            -1.0 / jnp.sqrt(state_dim), 1.0 / jnp.sqrt(state_dim))
    b2 = jax.random.uniform(kb2, (1, HIDDEN), jnp.float32,
                            -1.0 / jnp.sqrt(HIDDEN), 1.0 / jnp.sqrt(HIDDEN))
    b3 = jax.random.uniform(kb3, (1, action_dim * 2), jnp.float32,
                            -1.0 / jnp.sqrt(HIDDEN), 1.0 / jnp.sqrt(HIDDEN))
    return w1, b1, w2, b2, w3, b3


def reference_forward(x, w1, b1, w2, b2, w3, b3, action_dim):
    """Pure-JAX f32 reference of the same math."""
    w1, w2, w3 = (w.astype(jnp.float32) for w in (w1, w2, w3))
    h1 = jnp.maximum(x @ w1 + b1, 0.0)
    h2 = jnp.maximum(h1 @ w2 + b2, 0.0)
    h3 = jnp.tanh(h2 @ w3 + b3)
    mu, log_std = h3[:, :action_dim], h3[:, action_dim:]
    log_std = LOG_STD_MIN + 0.5 * (LOG_STD_MAX - LOG_STD_MIN) * (log_std + 1.0)
    return mu, jnp.exp(log_std)


if __name__ == "__main__":
    # Small shapes consistent with the module.
    B, state_dim, action_dim = 8, 16, 4

    key = jax.random.PRNGKey(0)
    kx, kp = jax.random.split(key)
    x = jax.random.normal(kx, (B, state_dim), dtype=jnp.float32)

    # --- f32 weights, single-tile path (tight check) ---
    params_f32 = init_params(kp, state_dim, action_dim, weight_dtype=jnp.float32)
    mu, std = stochastic_actor_forward(x, *params_f32, action_dim=action_dim)
    jax.block_until_ready((mu, std))
    mu_ref, std_ref = reference_forward(x, *params_f32, action_dim=action_dim)
    assert mu.shape == (B, action_dim) and std.shape == (B, action_dim)
    assert jnp.allclose(mu, mu_ref, atol=1e-5, rtol=1e-5)
    assert jnp.allclose(std, std_ref, atol=1e-5, rtol=1e-5)

    # --- multi-step grid path with batch padding (B=44, tile=16 -> grid=3) ---
    B2 = 44
    x2 = jax.random.normal(jax.random.PRNGKey(1), (B2, state_dim), dtype=jnp.float32)
    mu2, std2 = stochastic_actor_forward(x2, *params_f32, action_dim=action_dim,
                                         block_b=16)
    jax.block_until_ready((mu2, std2))
    mu2_ref, std2_ref = reference_forward(x2, *params_f32, action_dim=action_dim)
    assert mu2.shape == (B2, action_dim) and std2.shape == (B2, action_dim)
    assert jnp.allclose(mu2, mu2_ref, atol=1e-5, rtol=1e-5)
    assert jnp.allclose(std2, std2_ref, atol=1e-5, rtol=1e-5)

    # --- bf16 weights (v6e/v7x MXU fast path), f32 accumulate, loose check ---
    params_bf16 = init_params(kp, state_dim, action_dim, weight_dtype=jnp.bfloat16)
    mu3, std3 = stochastic_actor_forward(x, *params_bf16, action_dim=action_dim)
    jax.block_until_ready((mu3, std3))
    mu3_ref, std3_ref = reference_forward(x, *params_bf16, action_dim=action_dim)
    assert jnp.allclose(mu3, mu3_ref, atol=5e-2, rtol=5e-2)
    assert jnp.allclose(std3, std3_ref, atol=5e-2, rtol=5e-2)

    # TODO(synk): act()/log_prob() sampling paths (Normal rsample / log_prob) are
    # host-side distribution glue and are not part of this forward kernel.
    print("KERNEL_OK")
</pallas_src>

<mosaic_0001>
module attributes {stable_mosaic.version = 11 : i64} {
  func.func @_actor_kernel(%arg0: i32, %arg1: memref<8x16xf32, #tpu.memory_space<vmem>>, %arg2: memref<16x256xf32, #tpu.memory_space<vmem>>, %arg3: memref<1x256xf32, #tpu.memory_space<vmem>>, %arg4: memref<256x256xf32, #tpu.memory_space<vmem>>, %arg5: memref<1x256xf32, #tpu.memory_space<vmem>>, %arg6: memref<256x128xf32, #tpu.memory_space<vmem>>, %arg7: memref<1x128xf32, #tpu.memory_space<vmem>>, %arg8: memref<8x128xf32, #tpu.memory_space<vmem>>) attributes {dimension_semantics = [#tpu.dimension_semantics<parallel>], iteration_bounds = array<i64: 1>, scalar_prefetch = 0 : i64, scratch_operands = 0 : i64, tpu.core_type = #tpu.core_type<tc>, window_params = [{transform_indices = @transform_0, window_bounds = array<i64: 8, 16>}, {pipeline_mode = #tpu.pipeline_mode<synchronous>, transform_indices = @transform_1, window_bounds = array<i64: 16, 256>}, {pipeline_mode = #tpu.pipeline_mode<synchronous>, transform_indices = @transform_2, window_bounds = array<i64: 1, 256>}, {pipeline_mode = #tpu.pipeline_mode<synchronous>, transform_indices = @transform_3, window_bounds = array<i64: 256, 256>}, {pipeline_mode = #tpu.pipeline_mode<synchronous>, transform_indices = @transform_4, window_bounds = array<i64: 1, 256>}, {pipeline_mode = #tpu.pipeline_mode<synchronous>, transform_indices = @transform_5, window_bounds = array<i64: 256, 128>}, {pipeline_mode = #tpu.pipeline_mode<synchronous>, transform_indices = @transform_6, window_bounds = array<i64: 1, 128>}, {transform_indices = @transform_7, window_bounds = array<i64: 8, 128>}]} {
    %c0 = arith.constant 0 : index
    %c0_0 = arith.constant 0 : index
    %0 = vector.load %arg1[%c0, %c0_0] : memref<8x16xf32, #tpu.memory_space<vmem>>, vector<8x16xf32>
    %c0_1 = arith.constant 0 : index
    %c0_2 = arith.constant 0 : index
    %1 = vector.load %arg2[%c0_1, %c0_2] : memref<16x256xf32, #tpu.memory_space<vmem>>, vector<16x256xf32>
    %cst = arith.constant dense<0.000000e+00> : vector<8x256xf32>
    %2 = tpu.matmul %0, %1, %cst {dimension_numbers = #tpu.dot_dimension_numbers<[1], [0], [0], [1], [0, 0, 1, 1], [], []>} : vector<8x16xf32>, vector<16x256xf32>, vector<8x256xf32> -> vector<8x256xf32>
    %c0_3 = arith.constant 0 : index
    %c0_4 = arith.constant 0 : index
    %3 = vector.load %arg3[%c0_3, %c0_4] : memref<1x256xf32, #tpu.memory_space<vmem>>, vector<1x256xf32>
    %4 = vector.broadcast %3 : vector<1x256xf32> to vector<8x256xf32>
    %5 = arith.addf %2, %4 : vector<8x256xf32>
    %cst_5 = arith.constant 0.000000e+00 : f32
    %6 = vector.broadcast %cst_5 : f32 to vector<8x256xf32>
    %7 = arith.maximumf %5, %6 : vector<8x256xf32>
    %c0_6 = arith.constant 0 : index
    %c0_7 = arith.constant 0 : index
    %8 = vector.load %arg4[%c0_6, %c0_7] : memref<256x256xf32, #tpu.memory_space<vmem>>, vector<256x256xf32>
    %cst_8 = arith.constant dense<0.000000e+00> : vector<8x256xf32>
    %9 = tpu.matmul %7, %8, %cst_8 {dimension_numbers = #tpu.dot_dimension_numbers<[1], [0], [0], [1], [0, 0, 1, 1], [], []>} : vector<8x256xf32>, vector<256x256xf32>, vector<8x256xf32> -> vector<8x256xf32>
    %c0_9 = arith.constant 0 : index
    %c0_10 = arith.constant 0 : index
    %10 = vector.load %arg5[%c0_9, %c0_10] : memref<1x256xf32, #tpu.memory_space<vmem>>, vector<1x256xf32>
    %11 = vector.broadcast %10 : vector<1x256xf32> to vector<8x256xf32>
    %12 = arith.addf %9, %11 : vector<8x256xf32>
    %cst_11 = arith.constant 0.000000e+00 : f32
    %13 = vector.broadcast %cst_11 : f32 to vector<8x256xf32>
    %14 = arith.maximumf %12, %13 : vector<8x256xf32>
    %c0_12 = arith.constant 0 : index
    %c0_13 = arith.constant 0 : index
    %15 = vector.load %arg6[%c0_12, %c0_13] : memref<256x128xf32, #tpu.memory_space<vmem>>, vector<256x128xf32>
    %cst_14 = arith.constant dense<0.000000e+00> : vector<8x128xf32>
    %16 = tpu.matmul %14, %15, %cst_14 {dimension_numbers = #tpu.dot_dimension_numbers<[1], [0], [0], [1], [0, 0, 1, 1], [], []>} : vector<8x256xf32>, vector<256x128xf32>, vector<8x128xf32> -> vector<8x128xf32>
    %c0_15 = arith.constant 0 : index
    %c0_16 = arith.constant 0 : index
    %17 = vector.load %arg7[%c0_15, %c0_16] : memref<1x128xf32, #tpu.memory_space<vmem>>, vector<1x128xf32>
    %18 = vector.broadcast %17 : vector<1x128xf32> to vector<8x128xf32>
    %19 = arith.addf %16, %18 : vector<8x128xf32>
    %20 = math.tanh %19 : vector<8x128xf32>
    %cst_17 = arith.constant 1.000000e+00 : f32
    %21 = vector.broadcast %cst_17 : f32 to vector<8x128xf32>
    %22 = arith.addf %20, %21 : vector<8x128xf32>
    %cst_18 = arith.constant 3.500000e+00 : f32
    %23 = vector.broadcast %cst_18 : f32 to vector<8x128xf32>
    %24 = arith.mulf %23, %22 : vector<8x128xf32>
    %cst_19 = arith.constant -5.000000e+00 : f32
    %25 = vector.broadcast %cst_19 : f32 to vector<8x128xf32>
    %26 = arith.addf %25, %24 : vector<8x128xf32>
    %27 = math.exp %26 : vector<8x128xf32>
    %28 = tpu.iota {dimensions = array<i32: 1>} : vector<8x128xi32>
    %c4_i32 = arith.constant 4 : i32
    %29 = vector.broadcast %c4_i32 : i32 to vector<8x128xi32>
    %30 = arith.cmpi slt, %28, %29 : vector<8x128xi32>
    %31 = arith.select %30, %20, %27 : vector<8x128xi1>, vector<8x128xf32>
    %c0_20 = arith.constant 0 : index
    %c0_21 = arith.constant 0 : index
    %32 = vector.load %arg8[%c0_20, %c0_21] : memref<8x128xf32, #tpu.memory_space<vmem>>, vector<8x128xf32>
    tpu.vector_store %arg8[%c0_20, %c0_21], %31 {strides = array<i32>} : memref<8x128xf32, #tpu.memory_space<vmem>>, vector<8x128xf32>,
    return
  }
  func.func @transform_0(%arg0: i32) -> (i32, i32) {
    %c0_i32 = arith.constant 0 : i32
    %c0_i32_0 = arith.constant 0 : i32
    return %arg0, %c0_i32 : i32, i32
  }
  func.func @transform_1(%arg0: i32) -> (i32, i32) {
    %c0_i32 = arith.constant 0 : i32
    %c0_i32_0 = arith.constant 0 : i32
    %c0_i32_1 = arith.constant 0 : i32
    return %c0_i32, %c0_i32_0 : i32, i32
  }
  func.func @transform_2(%arg0: i32) -> (i32, i32) {
    %c0_i32 = arith.constant 0 : i32
    %c0_i32_0 = arith.constant 0 : i32
    %c0_i32_1 = arith.constant 0 : i32
    return %c0_i32, %c0_i32_0 : i32, i32
  }
  func.func @transform_3(%arg0: i32) -> (i32, i32) {
    %c0_i32 = arith.constant 0 : i32
    %c0_i32_0 = arith.constant 0 : i32
    %c0_i32_1 = arith.constant 0 : i32
    return %c0_i32, %c0_i32_0 : i32, i32
  }
  func.func @transform_4(%arg0: i32) -> (i32, i32) {
    %c0_i32 = arith.constant 0 : i32
    %c0_i32_0 = arith.constant 0 : i32
    %c0_i32_1 = arith.constant 0 : i32
    return %c0_i32, %c0_i32_0 : i32, i32
  }
  func.func @transform_5(%arg0: i32) -> (i32, i32) {
    %c0_i32 = arith.constant 0 : i32
    %c0_i32_0 = arith.constant 0 : i32
    %c0_i32_1 = arith.constant 0 : i32
    return %c0_i32, %c0_i32_0 : i32, i32
  }
  func.func @transform_6(%arg0: i32) -> (i32, i32) {
    %c0_i32 = arith.constant 0 : i32
    %c0_i32_0 = arith.constant 0 : i32
    %c0_i32_1 = arith.constant 0 : i32
    return %c0_i32, %c0_i32_0 : i32, i32
  }
  func.func @transform_7(%arg0: i32) -> (i32, i32) {
    %c0_i32 = arith.constant 0 : i32
    %c0_i32_0 = arith.constant 0 : i32
    return %arg0, %c0_i32 : i32, i32
  }
}

</mosaic_0001>

<bundles_post_ra>
// kernel: stochastic_actor_forward.1
= control target key start
LH: loop header
LB: loop body
LE: loop exit
PB: predicated region body
PF: predicated region fallthrough
CT: control target
= control target key end

     0   :  { %v435_v3 = vmov 0.0   ;;  %vm43_vm0 = vcmask 130048   ;;  %s791_s1 = inlined_call_operand.vmem [shape: f32[16,256], index: 1, kind: input, shape index: {}]   ;;  %s792_s0 = inlined_call_operand.vmem [shape: f32[8,16], index: 0, kind: input, shape index: {}]   ;;  %s793_s3 = inlined_call_operand.vmem [shape: f32[256,256], index: 3, kind: input, shape index: {}]   ;;  %s794_s5 = inlined_call_operand.vmem [shape: f32[256,128], index: 5, kind: input, shape index: {}]   ;;  %s795_s2 = inlined_call_operand.vmem [shape: f32[1,256], index: 2, kind: input, shape index: {}]   ;;  %s796_s4 = inlined_call_operand.vmem [shape: f32[1,256], index: 4, kind: input, shape index: {}]   ;;  %s797_s6 = inlined_call_operand.vmem [shape: f32[1,128], index: 6, kind: input, shape index: {}]   ;;  %s798_s7 = inlined_call_operand.vmem [shape: f32[8,128], index: 7, kind: output, shape index: {}]  }
   0x1   :  { %v30_v0 = vld [vmem:[%s791_s1 + $0x18] sm:$0xff]  ;;  %v29_v1 = vld [vmem:[%s791_s1 + $0x10] sm:$0xff]  ;;  %v28_v2 = vld [vmem:[%s791_s1 + $0x8] sm:$0xff]  ;;  %111 = vmatprep.mubr.f32.mxu0 %v435_v3 }
   0x2   :  { %75 = vmatprep.subr.mxu0 %v30_v0  ;;  %v27_v4 = vld [vmem:[%s791_s1] sm:$0xff]  ;;  %v151_v6 = vld [vmem:[%s793_s3 + $0xf8] sm:$0xff]  ;;  %v150_v7 = vld [vmem:[%s793_s3 + $0xf0] sm:$0xff] }
   0x3   :  { %v26_v5 = vld [vmem:[%s792_s0] sm:$0xff]  ;;  %76 = vmatpush1.msra.mxu0 %v29_v1  ;;  %196 = vmatprep.subr.mxu1 %v151_v6  ;;  %v149_v8 = vld [vmem:[%s793_s3 + $0xe8] sm:$0xff]  ;;  %v147_v10 = vld [vmem:[%s793_s3 + $0xd8] sm:$0xff] }
   0x4   :  { %v148_v9 = vld [vmem:[%s793_s3 + $0xe0] sm:$0xff]  ;;  %77 = vmatprep.subr.mxu0 %v28_v2  ;;  %197 = vmatpush1.msra.mxu1 %v150_v7  ;;  %v146_v11 = vld [vmem:[%s793_s3 + $0xd0] sm:$0xff]  ;;  %v145_v12 = vld [vmem:[%s793_s3 + $0xc8] sm:$0xff] }
   0x5   :  { %78 = vmatpush1.msra.mxu0 %v27_v4  ;;  %198 = vmatprep.subr.mxu1 %v149_v8  ;;  %v144_v13 = vld [vmem:[%s793_s3 + $0xc0] sm:$0xff]  ;;  %v143_v14 = vld [vmem:[%s793_s3 + $0xb8] sm:$0xff]  ;;  %v142_v15 = vld [vmem:[%s793_s3 + $0xb0] sm:$0xff] }
   0x6   :  { %393 = vmatmul.mubr.msk.f32.vlgmr.msra.gmra.mxu0 %vm43_vm0, %v26_v5  ;;  %199 = vmatpush1.msra.mxu1 %v148_v9  ;;  %v141_v16 = vld [vmem:[%s793_s3 + $0xa8] sm:$0xff]  ;;  %v140_v17 = vld [vmem:[%s793_s3 + $0xa0] sm:$0xff]  ;;  %v139_v18 = vld [vmem:[%s793_s3 + $0x98] sm:$0xff] }
   0x7   :  { %200 = vmatprep.subr.mxu1 %v147_v10  ;;  %v138_v19 = vld [vmem:[%s793_s3 + $0x90] sm:$0xff]  ;;  %v137_v20 = vld [vmem:[%s793_s3 + $0x88] sm:$0xff]  ;;  %v136_v21 = vld [vmem:[%s793_s3 + $0x80] sm:$0xff] }
   0x8   :  { %201 = vmatpush1.msra.mxu1 %v146_v11  ;;  %v135_v22 = vld [vmem:[%s793_s3 + $0x78] sm:$0xff]  ;;  %v134_v23 = vld [vmem:[%s793_s3 + $0x70] sm:$0xff]  ;;  %v133_v24 = vld [vmem:[%s793_s3 + $0x68] sm:$0xff] }
   0x9   :  { %202 = vmatprep.subr.mxu1 %v145_v12  ;;  %v132_v25 = vld [vmem:[%s793_s3 + $0x60] sm:$0xff]  ;;  %v131_v26 = vld [vmem:[%s793_s3 + $0x58] sm:$0xff]  ;;  %v130_v27 = vld [vmem:[%s793_s3 + $0x50] sm:$0xff] }
   0xa   :  { %203 = vmatpush1.msra.mxu1 %v144_v13  ;;  %v129_v28 = vld [vmem:[%s793_s3 + $0x48] sm:$0xff]  ;;  %v128_v29 = vld [vmem:[%s793_s3 + $0x40] sm:$0xff]  ;;  %v127_v30 = vld [vmem:[%s793_s3 + $0x38] sm:$0xff] }
   0xb   :  { %204 = vmatprep.subr.mxu1 %v143_v14  ;;  %v126_v31 = vld [vmem:[%s793_s3 + $0x30] sm:$0xff]  ;;  %v125_v32 = vld [vmem:[%s793_s3 + $0x28] sm:$0xff]  ;;  %v124_v33 = vld [vmem:[%s793_s3 + $0x20] sm:$0xff] }
   0xc   :  { %205 = vmatpush1.msra.mxu1 %v142_v15  ;;  %v123_v34 = vld [vmem:[%s793_s3 + $0x18] sm:$0xff]  ;;  %v122_v35 = vld [vmem:[%s793_s3 + $0x10] sm:$0xff]  ;;  %v121_v36 = vld [vmem:[%s793_s3 + $0x8] sm:$0xff] }
   0xd   :  { %206 = vmatprep.subr.mxu1 %v141_v16  ;;  %v120_v37 = vld [vmem:[%s793_s3] sm:$0xff]  ;;  %v183_v38 = vld [vmem:[%s793_s3 + $0x1f8] sm:$0xff]  ;;  %v182_v39 = vld [vmem:[%s793_s3 + $0x1f0] sm:$0xff] }
   0xe   :  { %207 = vmatpush1.msra.mxu1 %v140_v17  ;;  %v181_v40 = vld [vmem:[%s793_s3 + $0x1e8] sm:$0xff]  ;;  %v180_v41 = vld [vmem:[%s793_s3 + $0x1e0] sm:$0xff]  ;;  %v179_v42 = vld [vmem:[%s793_s3 + $0x1d8] sm:$0xff] }
   0xf   :  { %208 = vmatprep.subr.mxu1 %v139_v18  ;;  %v178_v43 = vld [vmem:[%s793_s3 + $0x1d0] sm:$0xff]  ;;  %v177_v44 = vld [vmem:[%s793_s3 + $0x1c8] sm:$0xff]  ;;  %v176_v45 = vld [vmem:[%s793_s3 + $0x1c0] sm:$0xff] }
  0x10   :  { %209 = vmatpush1.msra.mxu1 %v138_v19  ;;  %v175_v46 = vld [vmem:[%s793_s3 + $0x1b8] sm:$0xff]  ;;  %v174_v47 = vld [vmem:[%s793_s3 + $0x1b0] sm:$0xff]  ;;  %v173_v48 = vld [vmem:[%s793_s3 + $0x1a8] sm:$0xff] }
  0x11   :  { %210 = vmatprep.subr.mxu1 %v137_v20  ;;  %v172_v49 = vld [vmem:[%s793_s3 + $0x1a0] sm:$0xff]  ;;  %v171_v50 = vld [vmem:[%s793_s3 + $0x198] sm:$0xff]  ;;  %v170_v51 = vld [vmem:[%s793_s3 + $0x190] sm:$0xff] }
  0x12   :  { %211 = vmatpush1.msra.mxu1 %v136_v21  ;;  %v169_v52 = vld [vmem:[%s793_s3 + $0x188] sm:$0xff]  ;;  %v168_v53 = vld [vmem:[%s793_s3 + $0x180] sm:$0xff]  ;;  %v167_v54 = vld [vmem:[%s793_s3 + $0x178] sm:$0xff] }
  0x13   :  { %212 = vmatprep.subr.mxu1 %v135_v22  ;;  %v166_v55 = vld [vmem:[%s793_s3 + $0x170] sm:$0xff]  ;;  %v165_v56 = vld [vmem:[%s793_s3 + $0x168] sm:$0xff]  ;;  %v164_v57 = vld [vmem:[%s793_s3 + $0x160] sm:$0xff] }
  0x14   :  { %213 = vmatpush1.msra.mxu1 %v134_v23  ;;  %v163_v58 = vld [vmem:[%s793_s3 + $0x158] sm:$0xff]  ;;  %v162_v59 = vld [vmem:[%s793_s3 + $0x150] sm:$0xff]  ;;  %v161_v60 = vld [vmem:[%s793_s3 + $0x148] sm:$0xff] }
  0x15   :  { %214 = vmatprep.subr.mxu1 %v133_v24  ;;  %v160_v61 = vld [vmem:[%s793_s3 + $0x140] sm:$0xff]  ;;  %v159_v62 = vld [vmem:[%s793_s3 + $0x138] sm:$0xff]  ;;  %v158_v63 = vld [vmem:[%s793_s3 + $0x130] sm:$0xff] }
  0x16   :  { %215 = vmatpush1.msra.mxu1 %v132_v25  ;;  %v157_v0 = vld [vmem:[%s793_s3 + $0x128] sm:$0xff]  ;;  %v156_v1 = vld [vmem:[%s793_s3 + $0x120] sm:$0xff]  ;;  %v155_v2 = vld [vmem:[%s793_s3 + $0x118] sm:$0xff] }
  0x17   :  { %216 = vmatprep.subr.mxu1 %v131_v26  ;;  %v154_v3 = vld [vmem:[%s793_s3 + $0x110] sm:$0xff]  ;;  %v153_v4 = vld [vmem:[%s793_s3 + $0x108] sm:$0xff]  ;;  %v152_v5 = vld [vmem:[%s793_s3 + $0x100] sm:$0xff] }
  0x18   :  { %217 = vmatpush1.msra.mxu1 %v130_v27  ;;  %v300_v6 = vld [vmem:[%s794_s5 + $0xf8] sm:$0xff]  ;;  %v299_v8 = vld [vmem:[%s794_s5 + $0xf0] sm:$0xff]  ;;  %v298_v10 = vld [vmem:[%s794_s5 + $0xe8] sm:$0xff] }
  0x19   :  { %218 = vmatprep.subr.mxu1 %v129_v28  ;;  %v284_v7 = vld [vmem:[%s794_s5 + $0x78] sm:$0xff]  ;;  %395 = vmatprep.subr.mxu0 %v300_v6  ;;  %v283_v9 = vld [vmem:[%s794_s5 + $0x70] sm:$0xff]  ;;  %v282_v11 = vld [vmem:[%s794_s5 + $0x68] sm:$0xff] }
  0x1a   :  { %219 = vmatpush1.msra.mxu1 %v128_v29  ;;  %396 = vmatpush3.msra.mxu0 %v284_v7  ;;  %v297_v12 = vld [vmem:[%s794_s5 + $0xe0] sm:$0xff]  ;;  %v296_v14 = vld [vmem:[%s794_s5 + $0xd8] sm:$0xff]  ;;  %v295_v16 = vld [vmem:[%s794_s5 + $0xd0] sm:$0xff] }
  0x1b   :  { %220 = vmatprep.subr.mxu1 %v127_v30  ;;  %397 = vmatprep.subr.mxu0 %v299_v8  ;;  %v281_v13 = vld [vmem:[%s794_s5 + $0x60] sm:$0xff]  ;;  %v280_v15 = vld [vmem:[%s794_s5 + $0x58] sm:$0xff]  ;;  %v279_v17 = vld [vmem:[%s794_s5 + $0x50] sm:$0xff]  ;;  %v33_v30 = vlaneseq }
  0x1c   :  { %221 = vmatpush1.msra.mxu1 %v126_v31  ;;  %398 = vmatpush3.msra.mxu0 %v283_v9  ;;  %v294_v18 = vld [vmem:[%s794_s5 + $0xc8] sm:$0xff]  ;;  %v293_v20 = vld [vmem:[%s794_s5 + $0xc0] sm:$0xff]  ;;  %v292_v22 = vld [vmem:[%s794_s5 + $0xb8] sm:$0xff] }
  0x1d   :  { %222 = vmatprep.subr.mxu1 %v125_v32  ;;  %399 = vmatprep.subr.mxu0 %v298_v10  ;;  %v278_v19 = vld [vmem:[%s794_s5 + $0x48] sm:$0xff]  ;;  %v277_v21 = vld [vmem:[%s794_s5 + $0x40] sm:$0xff]  ;;  %v276_v23 = vld [vmem:[%s794_s5 + $0x38] sm:$0xff]  ;;  %v34_v31 = vshrl.u32 %v33_v30, 7  ;;  %v385_v6 = vand.u32 127, %v33_v30 }
  0x1e   :  { %223 = vmatpush1.msra.mxu1 %v124_v33  ;;  %400 = vmatpush3.msra.mxu0 %v282_v11  ;;  %v291_v24 = vld [vmem:[%s794_s5 + $0xb0] sm:$0xff]  ;;  %v290_v26 = vld [vmem:[%s794_s5 + $0xa8] sm:$0xff]  ;;  %v289_v28 = vld [vmem:[%s794_s5 + $0xa0] sm:$0xff] }
  0x1f   :  { %224 = vmatprep.subr.mxu1 %v123_v34  ;;  %401 = vmatprep.subr.mxu0 %v297_v12  ;;  %v275_v25 = vld [vmem:[%s794_s5 + $0x30] sm:$0xff]  ;;  %v274_v27 = vld [vmem:[%s794_s5 + $0x28] sm:$0xff]  ;;  %v273_v29 = vld [vmem:[%s794_s5 + $0x20] sm:$0xff]  ;;  %v35_v32 = vsub.s32 0, %v34_v31  ;;  %v39_v34 = vsub.s32 1, %v34_v31  ;;  %vm386_vm1 = vcmp.lt.s32.totalorder %v385_v6, 4 }
  0x20   :  { %225 = vmatpush1.msra.mxu1 %v122_v35  ;;  %402 = vmatpush3.msra.mxu0 %v281_v13  ;;  %v31_v33 = vld [vmem:[%s795_s2] sm:$0x3] }
  0x21   :  { %226 = vmatprep.subr.mxu1 %v121_v36  ;;  %403 = vmatprep.subr.mxu0 %v296_v14  ;;  %v36_v35 = vrot.slane %v31_v33, %v35_v32  ;;  %v40_v36 = vrot.slane %v31_v33, %v39_v34 }
  0x22   :  { %227 = vmatpush1.msra.mxu1 %v120_v37  ;;  %404 = vmatpush3.msra.mxu0 %v280_v15 }
  0x23   :  { %228 = vmatprep.subr.mxu1 %v183_v38  ;;  %405 = vmatprep.subr.mxu0 %v295_v16 }
  0x24   :  { %229 = vmatpush2.msra.mxu1 %v182_v39  ;;  %406 = vmatpush3.msra.mxu0 %v279_v17 }
  0x25   :  { %230 = vmatprep.subr.mxu1 %v181_v40  ;;  %407 = vmatprep.subr.mxu0 %v294_v18 }
  0x26   :  { %231 = vmatpush2.msra.mxu1 %v180_v41  ;;  %408 = vmatpush3.msra.mxu0 %v278_v19 }
  0x27   :  { %232 = vmatprep.subr.mxu1 %v179_v42  ;;  %409 = vmatprep.subr.mxu0 %v293_v20 }
  0x28   :  { %233 = vmatpush2.msra.mxu1 %v178_v43  ;;  %410 = vmatpush3.msra.mxu0 %v277_v21  ;;  %v288_v43 = vld [vmem:[%s794_s5 + $0x98] sm:$0xff] }
  0x29   :  { %234 = vmatprep.subr.mxu1 %v177_v44  ;;  %411 = vmatprep.subr.mxu0 %v292_v22  ;;  %v272_v44 = vld [vmem:[%s794_s5 + $0x18] sm:$0xff] }
  0x2a   :  { %235 = vmatpush2.msra.mxu1 %v176_v45  ;;  %412 = vmatpush3.msra.mxu0 %v276_v23  ;;  %v287_v45 = vld [vmem:[%s794_s5 + $0x90] sm:$0xff] }
  0x2b   :  { %236 = vmatprep.subr.mxu1 %v175_v46  ;;  %413 = vmatprep.subr.mxu0 %v291_v24  ;;  %v271_v46 = vld [vmem:[%s794_s5 + $0x10] sm:$0xff] }
  0x2c   :  { %237 = vmatpush2.msra.mxu1 %v174_v47  ;;  %414 = vmatpush3.msra.mxu0 %v275_v25  ;;  %v286_v47 = vld [vmem:[%s794_s5 + $0x88] sm:$0xff] }
  0x2d   :  { %238 = vmatprep.subr.mxu1 %v173_v48  ;;  %415 = vmatprep.subr.mxu0 %v290_v26  ;;  %v270_v48 = vld [vmem:[%s794_s5 + $0x8] sm:$0xff] }
  0x2e   :  { %239 = vmatpush2.msra.mxu1 %v172_v49  ;;  %416 = vmatpush3.msra.mxu0 %v274_v27  ;;  %v285_v49 = vld [vmem:[%s794_s5 + $0x80] sm:$0xff] }
  0x2f   :  { %240 = vmatprep.subr.mxu1 %v171_v50  ;;  %417 = vmatprep.subr.mxu0 %v289_v28  ;;  %v269_v50 = vld [vmem:[%s794_s5] sm:$0xff] }
  0x30   :  { %241 = vmatpush2.msra.mxu1 %v170_v51  ;;  %418 = vmatpush3.msra.mxu0 %v273_v29  ;;  %v184_v51 = vld [vmem:[%s796_s4] sm:$0x3] }
  0x31   :  { %242 = vmatprep.subr.mxu1 %v169_v52  ;;  %419 = vmatprep.subr.mxu0 %v288_v43  ;;  %v189_v52 = vrot.slane %v184_v51, %v35_v32 }
  0x32   :  { %243 = vmatpush2.msra.mxu1 %v168_v53  ;;  %420 = vmatpush3.msra.mxu0 %v272_v44  ;;  %v193_v53 = vrot.slane %v184_v51, %v39_v34 }
  0x33   :  { %244 = vmatprep.subr.mxu1 %v167_v54  ;;  %421 = vmatprep.subr.mxu0 %v287_v45 }
  0x34   :  { %245 = vmatpush2.msra.mxu1 %v166_v55  ;;  %422 = vmatpush3.msra.mxu0 %v271_v46 }
  0x35   :  { %246 = vmatprep.subr.mxu1 %v165_v56  ;;  %423 = vmatprep.subr.mxu0 %v286_v47 }
  0x36   :  { %247 = vmatpush2.msra.mxu1 %v164_v57  ;;  %424 = vmatpush3.msra.mxu0 %v270_v48 }
  0x37   :  { %248 = vmatprep.subr.mxu1 %v163_v58  ;;  %425 = vmatprep.subr.mxu0 %v285_v49 }
  0x38   :  { %249 = vmatpush2.msra.mxu1 %v162_v59  ;;  %426 = vmatpush3.msra.mxu0 %v269_v50 }
  0x39   :  { %250 = vmatprep.subr.mxu1 %v161_v60 }
  0x3a   :  { %251 = vmatpush2.msra.mxu1 %v160_v61  ;;  %v394_v61 = vld [vmem:[%s797_s6] ss:$0 sm:$0xff] }
  0x3b   :  { %252 = vmatprep.subr.mxu1 %v159_v62 }
  0x3c   :  { %253 = vmatpush2.msra.mxu1 %v158_v63 }
  0x3d   :  { %254 = vmatprep.subr.mxu1 %v157_v0 }
  0x3e   :  { %255 = vmatpush2.msra.mxu1 %v156_v1 }
  0x3f   :  { %256 = vmatprep.subr.mxu1 %v155_v2 }
  0x40   :  { %257 = vmatpush2.msra.mxu1 %v154_v3 }
  0x41   :  { %258 = vmatprep.subr.mxu1 %v153_v4 }
  0x42   :  { %259 = vmatpush2.msra.mxu1 %v152_v5 }
  0xc6   :  { %v113_v37 = vpop.f32.mrf.mxu0 }
  0xc7   :  { %v114_v38 = vadd.f32 %v113_v37, %v36_v35 }
  0xc8   :  { %v115_v39 = vpop.f32.mrf.mxu0 }
  0xc9   :  { %v116_v40 = vadd.f32 %v115_v39, %v40_v36  ;;  %v118_v42 = vmax.f32 %v114_v38, 0.0 }
  0xcb   :  { %v119_v41 = vmax.f32 %v116_v40, 0.0 }
  0xcd   :  { %260 = vmatprep.mubr.f32.mxu1 %v119_v41 }
  0xce   :  { %261 = vmatmul.mubr.f32.vlgmr.msra.gmra.mxu1 %v118_v42 }
 0x18e   :  { %v262_v54 = vpop.f32.mrf.mxu1 }
 0x18f   :  { %v263_v55 = vadd.f32 %v262_v54, %v189_v52 }
 0x190   :  { %v264_v56 = vpop.f32.mrf.mxu1 }
 0x191   :  { %v265_v57 = vadd.f32 %v264_v56, %v193_v53  ;;  %v267_v59 = vmax.f32 %v263_v55, 0.0 }
 0x193   :  { %v268_v58 = vmax.f32 %v265_v57, 0.0 }
 0x195   :  { %372 = vmatprep.mubr.f32.mxu0 %v268_v58 }
 0x196   :  { %373 = vmatmul.mubr.f32.vlgmr.msra.gmra.mxu0 %v267_v59 }
 0x256   :  { %v427_v60 = vpop.f32.mrf.mxu0 }
 0x258   :  { %v428_v62 = vpop.f32.mrf.mxu0 }
 0x259   :  { %v429_v63 = vadd.f32 %v428_v62, %v427_v60 }
 0x25b   :  { %v375_v0 = vadd.f32 %v429_v63, %v394_v61 }
 0x25d   :  { %431 = vtanh.f32 %v375_v0 }
 0x26a   :  { %v432_v1 = vpop.eup %431 }
 0x26b   :  { %v379_v2 = vadd.f32 1.0, %v432_v1 }
 0x26d   :  { %v380_v3 = vmul.f32 3.5, %v379_v2 }
 0x26f   :  { %v381_v4 = vadd.f32 -5.0, %v380_v3 }
 0x271   :  { %v382_v5 = vmul.f32 1.442695, %v381_v4 }
 0x273   :  { %433 = vpow2.f32 %v382_v5 }
 0x280   :  { %v434_v7 = vpop.eup %433 }
 0x281   :  { %v387_v8 = vsel %vm386_vm1, %v432_v1, %v434_v7 }
 0x282   :  { %388 = vst [vmem:[%s798_s7] sm:$0xff] %v387_v8 }

</bundles_post_ra>
